<compile_context>
chip_gen: v5e
topology: v5e:2x2
jax: 0.10.0
libtpu: 0.0.40
codegen_flags: <defaults>
</compile_context>

<pallas_src>
import functools

import jax
import jax.numpy as jnp
from jax import lax
from jax.experimental import pallas as pl
from jax.experimental.pallas import tpu as pltpu

_BN_EPS = 1e-5
_UNROLL_MAX_K = 16       # statically unroll the depthwise taps up to this K
_TAP_CHUNK = 8           # taps accumulated in tap-dtype before folding into f32


# ---------------------------------------------------------------------------
# Fused kernel: one (batch, time-tile) grid point computes the whole block.
# ---------------------------------------------------------------------------
def _quartz_block_kernel(*refs, n_cells, ksize, t_tile, halo, t_valid,
                         tap_dtype, use_scratch):
    """refs layout (inputs, output, scratch):

      x_left:  (1, halo,   Cin)   left-halo window of the raw input (clamped)
      x_cent:  (1, t_tile, Cin)   centre window (the tile itself)
      x_right: (1, halo,   Cin)   right-halo window (clamped)
      skip_w:  (Cin, Cout)        skip 1x1 weight with BN folded in
      skip_b:  (1, Cout)          skip bias with BN folded in
      per cell i: dw_i (K, Cin_i), pw_i (Cin_i, Cout), b_i (1, Cout)
      out:     (1, t_tile, Cout)
      [large-K only] win_buf (lw, Cin), mid_buf (lw, Cout) in tap dtype
    """
    pad = ksize // 2
    lw = t_tile + 2 * halo                      # halo'd window length

    xl_ref, xc_ref, xr_ref, skip_w_ref, skip_b_ref = refs[:5]
    cell_refs = refs[5:5 + 3 * n_cells]
    out_ref = refs[5 + 3 * n_cells]
    scratch = refs[6 + 3 * n_cells:]

    t = pl.program_id(1)
    # Global time index of window row 0; rows outside [0, t_valid) are zeroed,
    # which reproduces PyTorch's per-cell zero padding AND hides garbage coming
    # from the clamped / ragged halo reads at the sequence ends.
    g0 = t * t_tile - halo
    rows = lax.broadcasted_iota(jnp.int32, (lw, 1), 0) + g0
    valid = (rows >= 0) & (rows < t_valid)      # (lw, 1) bool, computed once

    # --- depthwise MAC helpers (chunked: partial sums in tap dtype, f32 acc) --
    def mac_unrolled(src_val, dw_ref, l_out):
        """src_val: (length, C) value in tap dtype -> f32 (l_out, C)."""
        y = None
        for k0 in range(0, ksize, _TAP_CHUNK):
            part = None
            for k in range(k0, min(k0 + _TAP_CHUNK, ksize)):
                term = src_val[k:k + l_out, :] * dw_ref[k:k + 1, :]
                part = term if part is None else part + term
            part = part.astype(jnp.float32)
            y = part if y is None else y + part
        return y

    def mac_ref(src_ref, dw_ref, l_out, c_src):
        """src_ref: VMEM ref in tap dtype; fori over 8-tap chunks (manual unroll)."""
        n_full = ksize // _TAP_CHUNK

        def chunk_body(c, acc, _src=src_ref, _dw=dw_ref, _l=l_out):
            k0 = c * _TAP_CHUNK
            part = _src[pl.ds(k0, _l), :] * _dw[pl.ds(k0, 1), :]
            for j in range(1, _TAP_CHUNK):
                part = part + _src[pl.ds(k0 + j, _l), :] * _dw[pl.ds(k0 + j, 1), :]
            return acc + part.astype(jnp.float32)

        y = jnp.zeros((l_out, c_src), jnp.float32)
        if n_full > 0:
            y = lax.fori_loop(0, n_full, chunk_body, y)
        for k in range(n_full * _TAP_CHUNK, ksize):       # static remainder taps
            y = y + (src_ref[pl.ds(k, l_out), :]
                     * dw_ref[pl.ds(k, 1), :]).astype(jnp.float32)
        return y

    # --- cells: depthwise -> pointwise matmul (+folded BN) -> ReLU -> mask ---
    length = lw
    if not use_scratch:
        # Small K: value-form window (no scratch store/reload), static unroll.
        h = jnp.where(valid,
                      jnp.concatenate([xl_ref[0], xc_ref[0], xr_ref[0]],
                                      axis=0).astype(tap_dtype), 0)
        for i in range(n_cells):
            dw_ref, pw_ref, b_ref = cell_refs[3 * i:3 * i + 3]
            l_out = length - 2 * pad
            y = mac_unrolled(h, dw_ref, l_out)
            z = jnp.dot(y.astype(pw_ref.dtype), pw_ref[...],
                        preferred_element_type=jnp.float32) + b_ref[...]
            off = (i + 1) * pad
            length = l_out
            if i < n_cells - 1:
                z = jnp.maximum(z, 0.0)
                # zero positions outside [0, T) = next cell's zero padding
                z = jnp.where(valid[off:off + l_out], z, 0.0)
                h = z.astype(tap_dtype)
            else:
                h = z                       # final cell stays f32 for the add
    else:
        # Large K: stage window / intermediates through VMEM refs, fori taps.
        win_buf, mid_buf = scratch
        win_buf[0:halo, :] = jnp.where(valid[0:halo],
                                       xl_ref[0].astype(tap_dtype), 0)
        win_buf[halo:halo + t_tile, :] = jnp.where(
            valid[halo:halo + t_tile], xc_ref[0].astype(tap_dtype), 0)
        win_buf[halo + t_tile:lw, :] = jnp.where(
            valid[halo + t_tile:lw], xr_ref[0].astype(tap_dtype), 0)
        src = win_buf
        h = None
        for i in range(n_cells):
            dw_ref, pw_ref, b_ref = cell_refs[3 * i:3 * i + 3]
            l_out = length - 2 * pad
            y = mac_ref(src, dw_ref, l_out, src.shape[1])
            z = jnp.dot(y.astype(pw_ref.dtype), pw_ref[...],
                        preferred_element_type=jnp.float32) + b_ref[...]
            off = (i + 1) * pad
            length = l_out
            if i < n_cells - 1:
                z = jnp.maximum(z, 0.0)
                z = jnp.where(valid[off:off + l_out], z, 0.0)
                mid_buf[0:l_out, :] = z.astype(tap_dtype)
                src = mid_buf
            else:
                h = z

    centre0 = halo - n_cells * pad
    h_centre = h[centre0:centre0 + t_tile, :]

    # --- skip branch LAST (shortens z_skip live range), then residual + ReLU --
    z_skip = jnp.dot(xc_ref[0].astype(skip_w_ref.dtype), skip_w_ref[...],
                     preferred_element_type=jnp.float32) + skip_b_ref[...]
    out_ref[0] = jnp.maximum(h_centre + z_skip, 0.0).astype(out_ref.dtype)


# ---------------------------------------------------------------------------
# Wrapper: BN/bias folding, tiling geometry, BlockSpecs, VMEM budget.
# ---------------------------------------------------------------------------
def _round_up(a, b):
    return (a + b - 1) // b * b


def _fold_bn(bn):
    scale = bn["gamma"].astype(jnp.float32) / jnp.sqrt(
        bn["var"].astype(jnp.float32) + _BN_EPS)
    shift = bn["beta"].astype(jnp.float32) - bn["mean"].astype(jnp.float32) * scale
    return scale, shift


def _fold_cell(p, mxu_dtype, tap_dtype):
    """Fold dw bias + pw bias + BN affine into the pointwise weight / one bias."""
    scale, shift = _fold_bn(p["bn"])
    w = p["pw_w"].astype(jnp.float32) * scale[None, :]               # (Cin, Cout)
    b = (p["dw_b"].astype(jnp.float32) @ w
         + p["pw_b"].astype(jnp.float32) * scale + shift)            # (Cout,)
    return (p["dw_w"].astype(tap_dtype),                             # VPU taps
            w.astype(mxu_dtype),                                     # MXU operand
            b.reshape(1, -1).astype(jnp.float32))


def _fold_skip(p, mxu_dtype):
    scale, shift = _fold_bn(p["bn"])
    w = p["w"].astype(jnp.float32) * scale[None, :]
    b = p["b"].astype(jnp.float32) * scale + shift
    return w.astype(mxu_dtype), b.reshape(1, -1).astype(jnp.float32)


def quartz_block(x_ntc, params, *, t_tile_target=512):
    """QuartzBlock.forward: relu(cells(x) + bn(conv1x1(x))), fully fused."""
    N, T, Cin = x_ntc.shape
    cells = params["cells"]
    n_cells = len(cells)
    K = cells[0]["dw_w"].shape[0]
    assert all(c["dw_w"].shape[0] == K for c in cells)
    assert K % 2 == 1, "kernel_size must be odd to preserve sequence length"
    pad = K // 2
    Cout = cells[0]["pw_w"].shape[1]
    in_dtype = x_ntc.dtype

    # bf16 depthwise MAC only when the activations are already bf16 (v6e/v7x
    # bf16 VALU); f32 activations keep f32 taps (v5e has no bf16 VALU and the
    # f32 reference precision is preserved).
    tap_dtype = jnp.bfloat16 if in_dtype == jnp.bfloat16 else jnp.float32
    mxu_dtype = in_dtype if in_dtype == jnp.bfloat16 else jnp.float32
    use_scratch = K > _UNROLL_MAX_K

    # --- fold all biases / BN affines into the pointwise weights -------------
    skip_w, skip_b = _fold_skip(params["skip"], mxu_dtype)
    folded = [_fold_cell(c, mxu_dtype, tap_dtype) for c in cells]

    # --- tiling geometry (no wrapper-side padding of x) ----------------------
    halo = _round_up(max(n_cells * pad, 1), 8)        # per-side halo, 8-aligned

    def pick_tile(tt):
        tt = min(tt, _round_up(T, 8))
        return max(halo, _round_up(tt, halo))         # halo must divide t_tile

    t_tile = pick_tile(t_tile_target)
    if N == 1:
        # keep at least two time tiles so both v7x TensorCores get work
        t_tile = min(t_tile, pick_tile(pl.cdiv(T, 2)))

    def nbytes(a):
        return int(a.size) * jnp.dtype(a.dtype).itemsize

    w_bytes = nbytes(skip_w) + nbytes(skip_b) + sum(
        nbytes(dw) + nbytes(pw) + nbytes(b) for dw, pw, b in folded)
    tap_isz = jnp.dtype(tap_dtype).itemsize
    in_isz = jnp.dtype(in_dtype).itemsize

    def vmem_estimate(tt):
        lw = tt + 2 * halo
        est = 2 * (2 * halo + tt) * Cin * in_isz      # input blocks (x2 buffers)
        est += 2 * tt * Cout * in_isz                 # output blocks (x2 buffers)
        est += 2 * w_bytes                            # weights (x2 buffers)
        if use_scratch:
            est += lw * (Cin + Cout) * tap_isz        # win_buf + mid_buf
        est += lw * Cin * tap_isz                     # live window value
        est += 3 * lw * Cout * 4                      # live y / z / h (f32)
        est += tt * Cout * 4                          # live z_skip (f32)
        return est

    # keep ~25% of physical VMEM as headroom (v7x: 64 MiB, v5e/v6e: 128 MiB)
    try:
        phys_vmem = int(pltpu.get_tpu_info().vmem_capacity_bytes)
    except Exception:
        phys_vmem = 64 * 1024 * 1024                  # assume the smallest (v7x)
    vmem_cap = (3 * phys_vmem) // 4
    while t_tile > halo and (3 * vmem_estimate(t_tile)) // 2 > vmem_cap:
        t_tile = max(halo, _round_up(t_tile // 2, halo))

    nT = pl.cdiv(T, t_tile)
    tph = t_tile // halo
    n_halo_blocks = pl.cdiv(T, halo)
    lw = t_tile + 2 * halo

    # Three views of the raw input: halo block indices clamped at the ends;
    # the kernel masks window rows outside [0, T) so clamped/ragged reads and
    # PyTorch's zero padding are both handled without any jnp.pad copy.
    # (For production shapes keep Cin/Cout multiples of 128: unmasked stores,
    # full MXU width.)
    in_specs = [
        pl.BlockSpec((1, halo, Cin),
                     lambda n, t: (n, jnp.maximum(t * tph - 1, 0), 0)),
        pl.BlockSpec((1, t_tile, Cin), lambda n, t: (n, t, 0)),
        pl.BlockSpec((1, halo, Cin),
                     lambda n, t: (n, jnp.minimum((t + 1) * tph,
                                                  n_halo_blocks - 1), 0)),
        pl.BlockSpec((Cin, Cout), lambda n, t: (0, 0)),
        pl.BlockSpec((1, Cout), lambda n, t: (0, 0)),
    ]
    args = [x_ntc, x_ntc, x_ntc, skip_w, skip_b]
    for dw, pw, b in folded:
        cin_i = dw.shape[1]
        in_specs += [
            pl.BlockSpec((K, cin_i), lambda n, t: (0, 0)),
            pl.BlockSpec((cin_i, Cout), lambda n, t: (0, 0)),
            pl.BlockSpec((1, Cout), lambda n, t: (0, 0)),
        ]
        args += [dw, pw, b]

    scratch_shapes = []
    if use_scratch:                 # large-K path stages through VMEM refs
        scratch_shapes = [pltpu.VMEM((lw, Cin), tap_dtype),
                          pltpu.VMEM((lw, Cout), tap_dtype)]

    kernel = functools.partial(
        _quartz_block_kernel, n_cells=n_cells, ksize=K, t_tile=t_tile,
        halo=halo, t_valid=T, tap_dtype=tap_dtype, use_scratch=use_scratch)

    compiler_kwargs = dict(dimension_semantics=("parallel", "parallel"))
    need = (3 * vmem_estimate(t_tile)) // 2
    if need > 12 * 1024 * 1024:     # above the most conservative (v5e) default
        compiler_kwargs["vmem_limit_bytes"] = int(
            min(max(need, 32 * 1024 * 1024), vmem_cap))

    # Output emitted at (N, T, Cout) directly; Pallas drops out-of-bounds
    # writes on the ragged last time tile (no trailing XLA slice/copy).
    return pl.pallas_call(
        kernel,
        out_shape=jax.ShapeDtypeStruct((N, T, Cout), in_dtype),
        grid=(N, nT),
        in_specs=in_specs,
        out_specs=pl.BlockSpec((1, t_tile, Cout), lambda n, t: (n, t, 0)),
        scratch_shapes=scratch_shapes,
        compiler_params=pltpu.CompilerParams(**compiler_kwargs),
    )(*args)


# ---------------------------------------------------------------------------
# Pure-JAX reference (PyTorch semantics) and deterministic parameter init
# ---------------------------------------------------------------------------
def _ref_bn(z, bn):
    scale = bn["gamma"] / jnp.sqrt(bn["var"] + _BN_EPS)
    return z * scale + (bn["beta"] - bn["mean"] * scale)


def ref_block(x, params):
    hi = lax.Precision.HIGHEST
    s = params["skip"]
    x_skip = _ref_bn(jnp.einsum("ntc,cd->ntd", x, s["w"], precision=hi) + s["b"],
                     s["bn"])
    h = x
    n_cells = len(params["cells"])
    for i, cp in enumerate(params["cells"]):
        K = cp["dw_w"].shape[0]
        pad = K // 2
        rhs = cp["dw_w"][:, None, :]                      # (K, 1, C) "WIO"
        y = lax.conv_general_dilated(
            h, rhs, window_strides=(1,), padding=[(pad, pad)],
            dimension_numbers=("NWC", "WIO", "NWC"),
            feature_group_count=h.shape[-1], precision=hi) + cp["dw_b"]
        z = jnp.einsum("ntc,cd->ntd", y, cp["pw_w"], precision=hi) + cp["pw_b"]
        z = _ref_bn(z, cp["bn"])
        if i < n_cells - 1:
            z = jnp.maximum(z, 0.0)
        h = z
    return jnp.maximum(h + x_skip, 0.0)


def _make_bn(keys, c):
    return {"gamma": 1.0 + 0.1 * jax.random.normal(keys[0], (c,), jnp.float32),
            "beta": 0.1 * jax.random.normal(keys[1], (c,), jnp.float32),
            "mean": 0.1 * jax.random.normal(keys[2], (c,), jnp.float32),
            "var": jnp.abs(jax.random.normal(keys[3], (c,), jnp.float32)) + 0.5}


def make_cell_params(key, cin, cout, K):
    ks = jax.random.split(key, 8)
    return {
        "dw_w": 0.2 * jax.random.normal(ks[0], (K, cin), jnp.float32),
        "dw_b": 0.1 * jax.random.normal(ks[1], (cin,), jnp.float32),
        "pw_w": jax.random.normal(ks[2], (cin, cout), jnp.float32) / jnp.sqrt(cin),
        "pw_b": 0.1 * jax.random.normal(ks[3], (cout,), jnp.float32),
        "bn": _make_bn(ks[4:8], cout),
    }


def make_skip_params(key, cin, cout):
    ks = jax.random.split(key, 6)
    return {
        "w": jax.random.normal(ks[0], (cin, cout), jnp.float32) / jnp.sqrt(cin),
        "b": 0.1 * jax.random.normal(ks[1], (cout,), jnp.float32),
        "bn": _make_bn(ks[2:6], cout),
    }


def make_block_params(key, in_ch, out_ch, K, n_cells):
    keys = jax.random.split(key, 1 + n_cells)
    cells = []
    cin = in_ch
    for i in range(n_cells):
        cells.append(make_cell_params(keys[1 + i], cin, out_ch, K))
        cin = out_ch
    return {"cells": cells, "skip": make_skip_params(keys[0], in_ch, out_ch)}


def _run_case(key, *, N, T, in_ch, out_ch, K, n_cells, t_tile_target=512):
    k_x, k_p = jax.random.split(key)
    x = jax.random.normal(k_x, (N, T, in_ch), jnp.float32)   # layout (N, T, C)
    params = make_block_params(k_p, in_ch, out_ch, K, n_cells)

    out = jax.block_until_ready(
        quartz_block(x, params, t_tile_target=t_tile_target))
    ref = ref_block(x, params)

    assert out.shape == (N, T, out_ch), out.shape
    max_err = float(jnp.max(jnp.abs(out - ref)))
    assert jnp.allclose(out, ref, rtol=1e-3, atol=1e-3), f"max_err={max_err}"
    return max_err


# ---------------------------------------------------------------------------
if __name__ == "__main__":
    key = jax.random.PRNGKey(0)
    k1, k2, k3 = jax.random.split(key, 3)

    # QuartzBlock(n_cells=3, kernel_size=3, in_ch=8, out_ch=16, s=0); single tile.
    _run_case(k1, N=2, T=32, in_ch=8, out_ch=16, K=3, n_cells=3)

    # Multi-tile path with a ragged last tile (T=50, 16-wide tiles): exercises
    # clamped halo index maps, boundary masks and masked output writes.
    _run_case(k2, N=1, T=50, in_ch=16, out_ch=16, K=5, n_cells=2,
              t_tile_target=16)

    # Large-K path (fori-loop chunked taps, VMEM-staged intermediates) with a
    # ragged last tile and clamped right halo.
    _run_case(k3, N=1, T=100, in_ch=16, out_ch=16, K=33, n_cells=2,
              t_tile_target=64)

    print("KERNEL_OK")
</pallas_src>

<mosaic_0001>
module attributes {stable_mosaic.version = 11 : i64} {
  func.func @_quartz_block_kernel(%arg0: i32, %arg1: i32, %arg2: memref<1x8x8xf32, #tpu.memory_space<vmem>>, %arg3: memref<1x32x8xf32, #tpu.memory_space<vmem>>, %arg4: memref<1x8x8xf32, #tpu.memory_space<vmem>>, %arg5: memref<8x16xf32, #tpu.memory_space<vmem>>, %arg6: memref<1x16xf32, #tpu.memory_space<vmem>>, %arg7: memref<3x8xf32, #tpu.memory_space<vmem>>, %arg8: memref<8x16xf32, #tpu.memory_space<vmem>>, %arg9: memref<1x16xf32, #tpu.memory_space<vmem>>, %arg10: memref<3x16xf32, #tpu.memory_space<vmem>>, %arg11: memref<16x16xf32, #tpu.memory_space<vmem>>, %arg12: memref<1x16xf32, #tpu.memory_space<vmem>>, %arg13: memref<3x16xf32, #tpu.memory_space<vmem>>, %arg14: memref<16x16xf32, #tpu.memory_space<vmem>>, %arg15: memref<1x16xf32, #tpu.memory_space<vmem>>, %arg16: memref<1x32x16xf32, #tpu.memory_space<vmem>>) attributes {dimension_semantics = [#tpu.dimension_semantics<parallel>, #tpu.dimension_semantics<parallel>], iteration_bounds = array<i64: 2, 1>, scalar_prefetch = 0 : i64, scratch_operands = 0 : i64, tpu.core_type = #tpu.core_type<tc>, window_params = [{transform_indices = @transform_0, window_bounds = array<i64: 1, 8, 8>}, {transform_indices = @transform_1, window_bounds = array<i64: 1, 32, 8>}, {transform_indices = @transform_2, window_bounds = array<i64: 1, 8, 8>}, {pipeline_mode = #tpu.pipeline_mode<synchronous>, transform_indices = @transform_3, window_bounds = array<i64: 8, 16>}, {pipeline_mode = #tpu.pipeline_mode<synchronous>, transform_indices = @transform_4, window_bounds = array<i64: 1, 16>}, {pipeline_mode = #tpu.pipeline_mode<synchronous>, transform_indices = @transform_5, window_bounds = array<i64: 3, 8>}, {pipeline_mode = #tpu.pipeline_mode<synchronous>, transform_indices = @transform_6, window_bounds = array<i64: 8, 16>}, {pipeline_mode = #tpu.pipeline_mode<synchronous>, transform_indices = @transform_7, window_bounds = array<i64: 1, 16>}, {pipeline_mode = #tpu.pipeline_mode<synchronous>, transform_indices = @transform_8, window_bounds = array<i64: 3, 16>}, {pipeline_mode = #tpu.pipeline_mode<synchronous>, transform_indices = @transform_9, window_bounds = array<i64: 16, 16>}, {pipeline_mode = #tpu.pipeline_mode<synchronous>, transform_indices = @transform_10, window_bounds = array<i64: 1, 16>}, {pipeline_mode = #tpu.pipeline_mode<synchronous>, transform_indices = @transform_11, window_bounds = array<i64: 3, 16>}, {pipeline_mode = #tpu.pipeline_mode<synchronous>, transform_indices = @transform_12, window_bounds = array<i64: 16, 16>}, {pipeline_mode = #tpu.pipeline_mode<synchronous>, transform_indices = @transform_13, window_bounds = array<i64: 1, 16>}, {transform_indices = @transform_14, window_bounds = array<i64: 1, 32, 16>}]} {
    %c32_i32 = arith.constant 32 : i32
    %0 = arith.muli %arg1, %c32_i32 : i32
    %c8_i32 = arith.constant 8 : i32
    %1 = arith.subi %0, %c8_i32 : i32
    %2 = tpu.iota {dimensions = array<i32: 0>} : vector<48x1xi32>
    %3 = vector.broadcast %1 : i32 to vector<48x1xi32>
    %4 = arith.addi %2, %3 : vector<48x1xi32>
    %c0_i32 = arith.constant 0 : i32
    %5 = vector.broadcast %c0_i32 : i32 to vector<48x1xi32>
    %6 = arith.cmpi sge, %4, %5 : vector<48x1xi32>
    %c32_i32_0 = arith.constant 32 : i32
    %7 = vector.broadcast %c32_i32_0 : i32 to vector<48x1xi32>
    %8 = arith.cmpi slt, %4, %7 : vector<48x1xi32>
    %9 = arith.andi %6, %8 : vector<48x1xi1>
    %c0 = arith.constant 0 : index
    %c0_1 = arith.constant 0 : index
    %c0_2 = arith.constant 0 : index
    %10 = vector.load %arg2[%c0, %c0_1, %c0_2] : memref<1x8x8xf32, #tpu.memory_space<vmem>>, vector<1x8x8xf32>
    %11 = vector.shape_cast %10 : vector<1x8x8xf32> to vector<8x8xf32>
    %c0_3 = arith.constant 0 : index
    %c0_4 = arith.constant 0 : index
    %c0_5 = arith.constant 0 : index
    %12 = vector.load %arg3[%c0_3, %c0_4, %c0_5] : memref<1x32x8xf32, #tpu.memory_space<vmem>>, vector<1x32x8xf32>
    %13 = vector.shape_cast %12 : vector<1x32x8xf32> to vector<32x8xf32>
    %c0_6 = arith.constant 0 : index
    %c0_7 = arith.constant 0 : index
    %c0_8 = arith.constant 0 : index
    %14 = vector.load %arg4[%c0_6, %c0_7, %c0_8] : memref<1x8x8xf32, #tpu.memory_space<vmem>>, vector<1x8x8xf32>
    %15 = vector.shape_cast %14 : vector<1x8x8xf32> to vector<8x8xf32>
    %16 = tpu.concatenate %11, %13, %15 in 0 : vector<8x8xf32>, vector<32x8xf32>, vector<8x8xf32> -> vector<48x8xf32>
    %c0_i32_9 = arith.constant 0 : i32
    %17 = arith.sitofp %c0_i32_9 : i32 to f32
    %18 = vector.shape_cast %9 : vector<48x1xi1> to vector<48x1xi1>
    %19 = vector.broadcast %18 : vector<48x1xi1> to vector<48x8xi1>
    %20 = vector.broadcast %17 : f32 to vector<48x8xf32>
    %21 = arith.select %19, %16, %20 : vector<48x8xi1>, vector<48x8xf32>
    %22 = vector.extract_strided_slice %21 {offsets = [0, 0], sizes = [46, 8], strides = [1, 1]} : vector<48x8xf32> to vector<46x8xf32>
    %c0_10 = arith.constant 0 : index
    %c0_11 = arith.constant 0 : index
    %23 = vector.load %arg7[%c0_10, %c0_11] : memref<3x8xf32, #tpu.memory_space<vmem>>, vector<1x8xf32>
    %24 = vector.broadcast %23 : vector<1x8xf32> to vector<46x8xf32>
    %25 = arith.mulf %22, %24 : vector<46x8xf32>
    %26 = vector.extract_strided_slice %21 {offsets = [1, 0], sizes = [46, 8], strides = [1, 1]} : vector<48x8xf32> to vector<46x8xf32>
    %c1 = arith.constant 1 : index
    %c0_12 = arith.constant 0 : index
    %27 = vector.load %arg7[%c1, %c0_12] : memref<3x8xf32, #tpu.memory_space<vmem>>, vector<1x8xf32>
    %28 = vector.broadcast %27 : vector<1x8xf32> to vector<46x8xf32>
    %29 = arith.mulf %26, %28 : vector<46x8xf32>
    %30 = arith.addf %25, %29 : vector<46x8xf32>
    %31 = vector.extract_strided_slice %21 {offsets = [2, 0], sizes = [46, 8], strides = [1, 1]} : vector<48x8xf32> to vector<46x8xf32>
    %c2 = arith.constant 2 : index
    %c0_13 = arith.constant 0 : index
    %32 = vector.load %arg7[%c2, %c0_13] : memref<3x8xf32, #tpu.memory_space<vmem>>, vector<1x8xf32>
    %33 = vector.broadcast %32 : vector<1x8xf32> to vector<46x8xf32>
    %34 = arith.mulf %31, %33 : vector<46x8xf32>
    %35 = arith.addf %30, %34 : vector<46x8xf32>
    %c0_14 = arith.constant 0 : index
    %c0_15 = arith.constant 0 : index
    %36 = vector.load %arg8[%c0_14, %c0_15] : memref<8x16xf32, #tpu.memory_space<vmem>>, vector<8x16xf32>
    %cst = arith.constant dense<0.000000e+00> : vector<46x16xf32>
    %37 = tpu.matmul %35, %36, %cst {dimension_numbers = #tpu.dot_dimension_numbers<[1], [0], [0], [1], [0, 0, 1, 1], [], []>} : vector<46x8xf32>, vector<8x16xf32>, vector<46x16xf32> -> vector<46x16xf32>
    %c0_16 = arith.constant 0 : index
    %c0_17 = arith.constant 0 : index
    %38 = vector.load %arg9[%c0_16, %c0_17] : memref<1x16xf32, #tpu.memory_space<vmem>>, vector<1x16xf32>
    %39 = vector.broadcast %38 : vector<1x16xf32> to vector<46x16xf32>
    %40 = arith.addf %37, %39 : vector<46x16xf32>
    %cst_18 = arith.constant 0.000000e+00 : f32
    %41 = vector.broadcast %cst_18 : f32 to vector<46x16xf32>
    %42 = arith.maximumf %40, %41 : vector<46x16xf32>
    %43 = vector.extract_strided_slice %9 {offsets = [1, 0], sizes = [46, 1], strides = [1, 1]} : vector<48x1xi1> to vector<46x1xi1>
    %cst_19 = arith.constant 0.000000e+00 : f32
    %44 = vector.shape_cast %43 : vector<46x1xi1> to vector<46x1xi1>
    %45 = vector.broadcast %44 : vector<46x1xi1> to vector<46x16xi1>
    %46 = vector.broadcast %cst_19 : f32 to vector<46x16xf32>
    %47 = arith.select %45, %42, %46 : vector<46x16xi1>, vector<46x16xf32>
    %48 = vector.extract_strided_slice %47 {offsets = [0, 0], sizes = [44, 16], strides = [1, 1]} : vector<46x16xf32> to vector<44x16xf32>
    %c0_20 = arith.constant 0 : index
    %c0_21 = arith.constant 0 : index
    %49 = vector.load %arg10[%c0_20, %c0_21] : memref<3x16xf32, #tpu.memory_space<vmem>>, vector<1x16xf32>
    %50 = vector.broadcast %49 : vector<1x16xf32> to vector<44x16xf32>
    %51 = arith.mulf %48, %50 : vector<44x16xf32>
    %52 = vector.extract_strided_slice %47 {offsets = [1, 0], sizes = [44, 16], strides = [1, 1]} : vector<46x16xf32> to vector<44x16xf32>
    %c1_22 = arith.constant 1 : index
    %c0_23 = arith.constant 0 : index
    %53 = vector.load %arg10[%c1_22, %c0_23] : memref<3x16xf32, #tpu.memory_space<vmem>>, vector<1x16xf32>
    %54 = vector.broadcast %53 : vector<1x16xf32> to vector<44x16xf32>
    %55 = arith.mulf %52, %54 : vector<44x16xf32>
    %56 = arith.addf %51, %55 : vector<44x16xf32>
    %57 = vector.extract_strided_slice %47 {offsets = [2, 0], sizes = [44, 16], strides = [1, 1]} : vector<46x16xf32> to vector<44x16xf32>
    %c2_24 = arith.constant 2 : index
    %c0_25 = arith.constant 0 : index
    %58 = vector.load %arg10[%c2_24, %c0_25] : memref<3x16xf32, #tpu.memory_space<vmem>>, vector<1x16xf32>
    %59 = vector.broadcast %58 : vector<1x16xf32> to vector<44x16xf32>
    %60 = arith.mulf %57, %59 : vector<44x16xf32>
    %61 = arith.addf %56, %60 : vector<44x16xf32>
    %c0_26 = arith.constant 0 : index
    %c0_27 = arith.constant 0 : index
    %62 = vector.load %arg11[%c0_26, %c0_27] : memref<16x16xf32, #tpu.memory_space<vmem>>, vector<16x16xf32>
    %cst_28 = arith.constant dense<0.000000e+00> : vector<44x16xf32>
    %63 = tpu.matmul %61, %62, %cst_28 {dimension_numbers = #tpu.dot_dimension_numbers<[1], [0], [0], [1], [0, 0, 1, 1], [], []>} : vector<44x16xf32>, vector<16x16xf32>, vector<44x16xf32> -> vector<44x16xf32>
    %c0_29 = arith.constant 0 : index
    %c0_30 = arith.constant 0 : index
    %64 = vector.load %arg12[%c0_29, %c0_30] : memref<1x16xf32, #tpu.memory_space<vmem>>, vector<1x16xf32>
    %65 = vector.broadcast %64 : vector<1x16xf32> to vector<44x16xf32>
    %66 = arith.addf %63, %65 : vector<44x16xf32>
    %cst_31 = arith.constant 0.000000e+00 : f32
    %67 = vector.broadcast %cst_31 : f32 to vector<44x16xf32>
    %68 = arith.maximumf %66, %67 : vector<44x16xf32>
    %69 = vector.extract_strided_slice %9 {offsets = [2, 0], sizes = [44, 1], strides = [1, 1]} : vector<48x1xi1> to vector<44x1xi1>
    %cst_32 = arith.constant 0.000000e+00 : f32
    %70 = vector.shape_cast %69 : vector<44x1xi1> to vector<44x1xi1>
    %71 = vector.broadcast %70 : vector<44x1xi1> to vector<44x16xi1>
    %72 = vector.broadcast %cst_32 : f32 to vector<44x16xf32>
    %73 = arith.select %71, %68, %72 : vector<44x16xi1>, vector<44x16xf32>
    %74 = vector.extract_strided_slice %73 {offsets = [0, 0], sizes = [42, 16], strides = [1, 1]} : vector<44x16xf32> to vector<42x16xf32>
    %c0_33 = arith.constant 0 : index
    %c0_34 = arith.constant 0 : index
    %75 = vector.load %arg13[%c0_33, %c0_34] : memref<3x16xf32, #tpu.memory_space<vmem>>, vector<1x16xf32>
    %76 = vector.broadcast %75 : vector<1x16xf32> to vector<42x16xf32>
    %77 = arith.mulf %74, %76 : vector<42x16xf32>
    %78 = vector.extract_strided_slice %73 {offsets = [1, 0], sizes = [42, 16], strides = [1, 1]} : vector<44x16xf32> to vector<42x16xf32>
    %c1_35 = arith.constant 1 : index
    %c0_36 = arith.constant 0 : index
    %79 = vector.load %arg13[%c1_35, %c0_36] : memref<3x16xf32, #tpu.memory_space<vmem>>, vector<1x16xf32>
    %80 = vector.broadcast %79 : vector<1x16xf32> to vector<42x16xf32>
    %81 = arith.mulf %78, %80 : vector<42x16xf32>
    %82 = arith.addf %77, %81 : vector<42x16xf32>
    %83 = vector.extract_strided_slice %73 {offsets = [2, 0], sizes = [42, 16], strides = [1, 1]} : vector<44x16xf32> to vector<42x16xf32>
    %c2_37 = arith.constant 2 : index
    %c0_38 = arith.constant 0 : index
    %84 = vector.load %arg13[%c2_37, %c0_38] : memref<3x16xf32, #tpu.memory_space<vmem>>, vector<1x16xf32>
    %85 = vector.broadcast %84 : vector<1x16xf32> to vector<42x16xf32>
    %86 = arith.mulf %83, %85 : vector<42x16xf32>
    %87 = arith.addf %82, %86 : vector<42x16xf32>
    %c0_39 = arith.constant 0 : index
    %c0_40 = arith.constant 0 : index
    %88 = vector.load %arg14[%c0_39, %c0_40] : memref<16x16xf32, #tpu.memory_space<vmem>>, vector<16x16xf32>
    %cst_41 = arith.constant dense<0.000000e+00> : vector<42x16xf32>
    %89 = tpu.matmul %87, %88, %cst_41 {dimension_numbers = #tpu.dot_dimension_numbers<[1], [0], [0], [1], [0, 0, 1, 1], [], []>} : vector<42x16xf32>, vector<16x16xf32>, vector<42x16xf32> -> vector<42x16xf32>
    %c0_42 = arith.constant 0 : index
    %c0_43 = arith.constant 0 : index
    %90 = vector.load %arg15[%c0_42, %c0_43] : memref<1x16xf32, #tpu.memory_space<vmem>>, vector<1x16xf32>
    %91 = vector.broadcast %90 : vector<1x16xf32> to vector<42x16xf32>
    %92 = arith.addf %89, %91 : vector<42x16xf32>
    %93 = vector.extract_strided_slice %92 {offsets = [5, 0], sizes = [32, 16], strides = [1, 1]} : vector<42x16xf32> to vector<32x16xf32>
    %c0_44 = arith.constant 0 : index
    %c0_45 = arith.constant 0 : index
    %c0_46 = arith.constant 0 : index
    %94 = vector.load %arg3[%c0_44, %c0_45, %c0_46] : memref<1x32x8xf32, #tpu.memory_space<vmem>>, vector<1x32x8xf32>
    %95 = vector.shape_cast %94 : vector<1x32x8xf32> to vector<32x8xf32>
    %c0_47 = arith.constant 0 : index
    %c0_48 = arith.constant 0 : index
    %96 = vector.load %arg5[%c0_47, %c0_48] : memref<8x16xf32, #tpu.memory_space<vmem>>, vector<8x16xf32>
    %cst_49 = arith.constant dense<0.000000e+00> : vector<32x16xf32>
    %97 = tpu.matmul %95, %96, %cst_49 {dimension_numbers = #tpu.dot_dimension_numbers<[1], [0], [0], [1], [0, 0, 1, 1], [], []>} : vector<32x8xf32>, vector<8x16xf32>, vector<32x16xf32> -> vector<32x16xf32>
    %c0_50 = arith.constant 0 : index
    %c0_51 = arith.constant 0 : index
    %98 = vector.load %arg6[%c0_50, %c0_51] : memref<1x16xf32, #tpu.memory_space<vmem>>, vector<1x16xf32>
    %99 = vector.broadcast %98 : vector<1x16xf32> to vector<32x16xf32>
    %100 = arith.addf %97, %99 : vector<32x16xf32>
    %101 = arith.addf %93, %100 : vector<32x16xf32>
    %cst_52 = arith.constant 0.000000e+00 : f32
    %102 = vector.broadcast %cst_52 : f32 to vector<32x16xf32>
    %103 = arith.maximumf %101, %102 : vector<32x16xf32>
    %c0_53 = arith.constant 0 : index
    %c0_54 = arith.constant 0 : index
    %c0_55 = arith.constant 0 : index
    %104 = vector.load %arg16[%c0_53, %c0_54, %c0_55] : memref<1x32x16xf32, #tpu.memory_space<vmem>>, vector<1x32x16xf32>
    %105 = vector.shape_cast %104 : vector<1x32x16xf32> to vector<32x16xf32>
    %106 = vector.shape_cast %103 : vector<32x16xf32> to vector<1x32x16xf32>
    tpu.vector_store %arg16[%c0_53, %c0_54, %c0_55], %106 {strides = array<i32>} : memref<1x32x16xf32, #tpu.memory_space<vmem>>, vector<1x32x16xf32>,
    return
  }
  func.func @transform_0(%arg0: i32, %arg1: i32) -> (i32, i32, i32) {
    %c4_i32 = arith.constant 4 : i32
    %0 = arith.muli %arg1, %c4_i32 : i32
    %c1_i32 = arith.constant 1 : i32
    %1 = arith.subi %0, %c1_i32 : i32
    %c0_i32 = arith.constant 0 : i32
    %2 = arith.maxsi %1, %c0_i32 : i32
    %c0_i32_0 = arith.constant 0 : i32
    %c0_i32_1 = arith.constant 0 : i32
    return %arg0, %2, %c0_i32_0 : i32, i32, i32
  }
  func.func @transform_1(%arg0: i32, %arg1: i32) -> (i32, i32, i32) {
    %c0_i32 = arith.constant 0 : i32
    %c0_i32_0 = arith.constant 0 : i32
    return %arg0, %arg1, %c0_i32 : i32, i32, i32
  }
  func.func @transform_2(%arg0: i32, %arg1: i32) -> (i32, i32, i32) {
    %c1_i32 = arith.constant 1 : i32
    %0 = arith.addi %arg1, %c1_i32 : i32
    %c4_i32 = arith.constant 4 : i32
    %1 = arith.muli %0, %c4_i32 : i32
    %c3_i32 = arith.constant 3 : i32
    %2 = arith.minsi %1, %c3_i32 : i32
    %c0_i32 = arith.constant 0 : i32
    %c0_i32_0 = arith.constant 0 : i32
    return %arg0, %2, %c0_i32 : i32, i32, i32
  }
  func.func @transform_3(%arg0: i32, %arg1: i32) -> (i32, i32) {
    %c0_i32 = arith.constant 0 : i32
    %c0_i32_0 = arith.constant 0 : i32
    %c0_i32_1 = arith.constant 0 : i32
    return %c0_i32, %c0_i32_0 : i32, i32
  }
  func.func @transform_4(%arg0: i32, %arg1: i32) -> (i32, i32) {
    %c0_i32 = arith.constant 0 : i32
    %c0_i32_0 = arith.constant 0 : i32
    %c0_i32_1 = arith.constant 0 : i32
    return %c0_i32, %c0_i32_0 : i32, i32
  }
  func.func @transform_5(%arg0: i32, %arg1: i32) -> (i32, i32) {
    %c0_i32 = arith.constant 0 : i32
    %c0_i32_0 = arith.constant 0 : i32
    %c0_i32_1 = arith.constant 0 : i32
    return %c0_i32, %c0_i32_0 : i32, i32
  }
  func.func @transform_6(%arg0: i32, %arg1: i32) -> (i32, i32) {
    %c0_i32 = arith.constant 0 : i32
    %c0_i32_0 = arith.constant 0 : i32
    %c0_i32_1 = arith.constant 0 : i32
    return %c0_i32, %c0_i32_0 : i32, i32
  }
  func.func @transform_7(%arg0: i32, %arg1: i32) -> (i32, i32) {
    %c0_i32 = arith.constant 0 : i32
    %c0_i32_0 = arith.constant 0 : i32
    %c0_i32_1 = arith.constant 0 : i32
    return %c0_i32, %c0_i32_0 : i32, i32
  }
  func.func @transform_8(%arg0: i32, %arg1: i32) -> (i32, i32) {
    %c0_i32 = arith.constant 0 : i32
    %c0_i32_0 = arith.constant 0 : i32
    %c0_i32_1 = arith.constant 0 : i32
    return %c0_i32, %c0_i32_0 : i32, i32
  }
  func.func @transform_9(%arg0: i32, %arg1: i32) -> (i32, i32) {
    %c0_i32 = arith.constant 0 : i32
    %c0_i32_0 = arith.constant 0 : i32
    %c0_i32_1 = arith.constant 0 : i32
    return %c0_i32, %c0_i32_0 : i32, i32
  }
  func.func @transform_10(%arg0: i32, %arg1: i32) -> (i32, i32) {
    %c0_i32 = arith.constant 0 : i32
    %c0_i32_0 = arith.constant 0 : i32
    %c0_i32_1 = arith.constant 0 : i32
    return %c0_i32, %c0_i32_0 : i32, i32
  }
  func.func @transform_11(%arg0: i32, %arg1: i32) -> (i32, i32) {
    %c0_i32 = arith.constant 0 : i32
    %c0_i32_0 = arith.constant 0 : i32
    %c0_i32_1 = arith.constant 0 : i32
    return %c0_i32, %c0_i32_0 : i32, i32
  }
  func.func @transform_12(%arg0: i32, %arg1: i32) -> (i32, i32) {
    %c0_i32 = arith.constant 0 : i32
    %c0_i32_0 = arith.constant 0 : i32
    %c0_i32_1 = arith.constant 0 : i32
    return %c0_i32, %c0_i32_0 : i32, i32
  }
  func.func @transform_13(%arg0: i32, %arg1: i32) -> (i32, i32) {
    %c0_i32 = arith.constant 0 : i32
    %c0_i32_0 = arith.constant 0 : i32
    %c0_i32_1 = arith.constant 0 : i32
    return %c0_i32, %c0_i32_0 : i32, i32
  }
  func.func @transform_14(%arg0: i32, %arg1: i32) -> (i32, i32, i32) {
    %c0_i32 = arith.constant 0 : i32
    %c0_i32_0 = arith.constant 0 : i32
    return %arg0, %arg1, %c0_i32 : i32, i32, i32
  }
}

</mosaic_0001>

<bundles_post_ra>
// kernel: tpu_custom_call.1
= control target key start
LH: loop header
LB: loop body
LE: loop exit
PB: predicated region body
PF: predicated region fallthrough
CT: control target
= control target key end

     0   :  { %s1583_s27 = smov 0   ;;  %s1585_s28 = smov 0   ;;  %s1815_s0 = inlined_call_operand.vmem [shape: f32[2,32,8], index: 0, kind: input, shape index: {}]   ;;  %s1816_s1 = inlined_call_operand.vmem [shape: f32[2,32,8], index: 1, kind: input, shape index: {}]   ;;  %s1817_s2 = inlined_call_operand.vmem [shape: f32[2,32,8], index: 2, kind: input, shape index: {}]   ;;  %s1818_s3 = inlined_call_operand.vmem [shape: f32[8,16], index: 3, kind: input, shape index: {}]   ;;  %s1819_s4 = inlined_call_operand.vmem [shape: f32[1,16], index: 4, kind: input, shape index: {}]   ;;  %s1820_s5 = inlined_call_operand.vmem [shape: f32[3,8], index: 5, kind: input, shape index: {}]   ;;  %s1821_s6 = inlined_call_operand.vmem [shape: f32[8,16], index: 6, kind: input, shape index: {}]   ;;  %s1822_s7 = inlined_call_operand.vmem [shape: f32[1,16], index: 7, kind: input, shape index: {}]   ;;  %s1823_s8 = inlined_call_operand.vmem [shape: f32[3,16], index: 8, kind: input, shape index: {}]   ;;  %s1824_s9 = inlined_call_operand.vmem [shape: f32[16,16], index: 9, kind: input, shape index: {}]   ;;  %s1825_s10 = inlined_call_operand.vmem [shape: f32[1,16], index: 10, kind: input, shape index: {}]   ;;  %s1826_s11 = inlined_call_operand.vmem [shape: f32[3,16], index: 11, kind: input, shape index: {}]   ;;  %s1827_s12 = inlined_call_operand.vmem [shape: f32[16,16], index: 12, kind: input, shape index: {}]   ;;  %s1828_s13 = inlined_call_operand.vmem [shape: f32[1,16], index: 13, kind: input, shape index: {}]   ;;  %s1829_s14 = inlined_call_operand.vmem [shape: f32[2,32,16], index: 14, kind: output, shape index: {}]  }
   0x1   :  { %s1587_s29 = smov 0  }
   0x2 LB: > { %s36_s0 = sadd.s32 1, %s1502_s28  ;;  %p1409_p0 = scmp.ge.s32.totalorder %s1506_s29, 1  ;;  %s1506_s29 = sphi %s1587_s29, %s24_s29   ;;  %s1502_s28 = sphi %s1585_s28, %s1831_s28   ;;  %s1498_s27 = sphi %s1583_s27, %s1830_s27  }
   0x3   : > { %p38_p1 = scmp.ge.s32.totalorder %s36_s0, 2  ;;  %p495_p2 = scmp.lt.s32.totalorder %s1506_s29, 3 }
   0x5   : > { %s1833_s0 = smov (%p38_p1, %s36_s0), 0  ;;  %p496_p3 = pnand %p1409_p0, %p495_p2 }
   0x6   : > { %p590_p4 = scmp.lt.s32.totalorder (!%p496_p3), %s1498_s27, 1 }
   0x7   : > { %499 = sbr.rel (%p496_p3) target bundleno = 520 (0x208), region = 76 }
   0xc   : > { %v767_v0 = vld [vmem:[%s1821_s6] sm:$0xff]  ;;  %s1835_s27 = smov (!%p590_p4, %s1498_s27), 1  ;;  %vm705_vm0 = vcmask 1046528   ;;  %vm743_vm1 = vcmask 1045504   ;;  %vm772_vm2 = vcmask 64512   ;;  %v945_v54 = vld [vmem:[%s1824_s9 + $0x8] sm:$0xff] }
   0xd   : > { %806 = vmatpush.msra.mxu0 %v767_v0  ;;  %v1472_v1 = vld [vmem:[%s1820_s5 + $0x1] ss:$0 sm:$0xff]  ;;  %v1471_v2 = vld [vmem:[%s1820_s5] ss:$0 sm:$0xff]  ;;  %v1473_v3 = vld [vmem:[%s1820_s5 + $0x2] ss:$0 sm:$0xff]  ;;  %994 = vmatpush.msra.mxu1 %v945_v54 }
   0xe   : > { %v693_v4 = vmul.f32 0.0, %v1472_v1  ;;  %s1443_s21 = sshll.u32 %s1835_s27, 5  ;;  %v731_v5 = vmul.f32 0.0, %v1473_v3  ;;  %v1632_v13 = vmul.f32 0.0, %v1471_v2  ;;  %v1474_v55 = vld [vmem:[%s1822_s7] ss:$0 sm:$0xff] }
   0xf   : > { %s597_s24 = scalar_lea.vmem %s1816_s1, %s1443_s21  ;;  %v944_v56 = vld [vmem:[%s1824_s9] sm:$0xff]  ;;  %vm838_vm3 = vcmask 1040384   ;;  %vm967_vm4 = vcmask 130048   ;;  %vm1027_vm5 = vcmask 1041408   ;;  %s1793_s17 = scalar_lea.vmem %s1829_s14, %s1443_s21  ;;  %vm1275_vm6 = vcmask 130053  }
  0x10   : > { %v1621_v6 = vld [vmem:[%s597_s24] sm:$0xff]  ;;  %v1623_v7 = vrot.slane %v693_v4, 1  ;;  %v1625_v8 = vld [vmem:[%s597_s24 + $0x8] sm:$0xff]  ;;  %v1629_v11 = vrot.slane %v731_v5, 2  ;;  %v1635_v18 = vld [vmem:[%s597_s24 + $0x10] sm:$0xff]  ;;  %995 = vmatpush.msra.mxu1 %v944_v56  ;;  %vm1252_vm7 = vcmask 1044480  }
  0x11   : > { %v694_v9 = vmul.f32 %v1472_v1, %v1621_v6  ;;  %v732_v10 = vmul.f32 %v1473_v3, %v1621_v6  ;;  %v695_v12 = vmul.f32 %v1472_v1, %v1625_v8  ;;  %v733_v17 = vmul.f32 %v1473_v3, %v1625_v8  ;;  %v1648_v31 = vld [vmem:[%s597_s24 + $0x18] sm:$0xff]  ;;  %v1476_v61 = vld [vmem:[%s1823_s8 + $0x1] ss:$0 sm:$0xff]  ;;  %v1477_v4 = vld [vmem:[%s1823_s8 + $0x2] ss:$0 sm:$0xff] }
  0x12   : > { %v686_v22 = vmul.f32 %v1471_v2, %v1621_v6  ;;  %v696_v25 = vmul.f32 %v1472_v1, %v1635_v18  ;;  %v734_v30 = vmul.f32 %v1473_v3, %v1635_v18  ;;  %v687_v33 = vmul.f32 %v1471_v2, %v1625_v8 }
  0x13   : > { %v707_v14 = vrot.slane %v694_v9, 1  ;;  %v745_v15 = vrot.slane %v732_v10, 2  ;;  %v709_v16 = vrot.slane %v695_v12, 1  ;;  %v747_v24 = vrot.slane %v733_v17, 2 }
  0x14   : > { %v711_v29 = vrot.slane %v696_v25, 1  ;;  %v749_v35 = vrot.slane %v734_v30, 2  ;;  %v697_v36 = vmul.f32 %v1472_v1, %v1648_v31  ;;  %v735_v40 = vmul.f32 %v1473_v3, %v1648_v31 }
  0x15   : > { %v708_v19 = vsel %vm705_vm0, %v1623_v7, %v707_v14  ;;  %v746_v20 = vsel %vm743_vm1, %v1629_v11, %v745_v15  ;;  %v710_v23 = vsel %vm705_vm0, %v707_v14, %v709_v16  ;;  %v748_v28 = vsel %vm743_vm1, %v745_v15, %v747_v24  ;;  %v1475_v14 = vld [vmem:[%s1823_s8] ss:$0 sm:$0xff] }
  0x16   : > { %v723_v21 = vadd.f32 %v708_v19, %v1632_v13  ;;  %v724_v27 = vadd.f32 %v710_v23, %v686_v22  ;;  %v712_v34 = vsel %vm705_vm0, %v709_v16, %v711_v29  ;;  %v750_v38 = vsel %vm743_vm1, %v747_v24, %v749_v35 }
  0x17   : > { %v725_v37 = vadd.f32 %v712_v34, %v687_v33  ;;  %v713_v39 = vrot.slane %v697_v36, 1  ;;  %v688_v42 = vmul.f32 %v1471_v2, %v1635_v18  ;;  %v751_v44 = vrot.slane %v735_v40, 2 }
  0x18   : > { %v761_v26 = vadd.f32 %v746_v20, %v723_v21  ;;  %v762_v32 = vadd.f32 %v748_v28, %v724_v27  ;;  %v689_v48 = vmul.f32 %v1471_v2, %v1648_v31  ;;  %v872_v1 = vmul.f32 0.0, %v1476_v61 }
  0x19   : > { %v763_v41 = vadd.f32 %v750_v38, %v725_v37  ;;  %v714_v43 = vsel %vm705_vm0, %v711_v29, %v713_v39  ;;  %v752_v46 = vsel %vm743_vm1, %v749_v35, %v751_v44  ;;  %v716_v49 = vsel %vm705_vm0, %v713_v39, %v1623_v7 }
  0x1a   : > { %1418 = vmatmul.msk.f32.vlgmr.msra.gmra.mxu0 %vm772_vm2, %v761_v26  ;;  %v726_v45 = vadd.f32 %v714_v43, %v688_v42  ;;  %v727_v50 = vadd.f32 %v716_v49, %v689_v48  ;;  %v754_v51 = vsel %vm743_vm1, %v751_v44, %v1629_v11  ;;  %v1683_v12 = vrot.slane %v872_v1, 1 }
  0x1b   : > { %v909_v17 = vmul.f32 0.0, %v1477_v4  ;;  %v864_v20 = vmul.f32 0.0, %v1475_v14  ;;  %vm1280_vm8 = vcmask 126976  }
  0x1c   : > { %v764_v47 = vadd.f32 %v752_v46, %v726_v45  ;;  %v765_v52 = vadd.f32 %v754_v51, %v727_v50 }
  0x1d   : > { %v921_v27 = vrot.slane %v909_v17, 2 }
  0x22   : > { %1419 = vmatmul.msk.f32.gmra.mxu0 %vm772_vm2, %v762_v32 }
  0x2a   : > { %1420 = vmatmul.msk.f32.gmra.mxu0 %vm772_vm2, %v763_v41 }
  0x32   : > { %1421 = vmatmul.msk.f32.gmra.mxu0 %vm772_vm2, %v764_v47 }
  0x3a   : > { %1422 = vmatmul.msk.f32.gmra.mxu0 %vm772_vm2, %v765_v52 }
  0x97   : > { %v808_v53 = vpop.f32.mrf.mxu0 }
  0x98   : > { %v809_v57 = vadd.f32 %v1474_v55, %v808_v53 }
  0x9a   : > { %v826_v59 = vmax.f32 %v809_v57, 0.0 }
  0x9c   : > { %v839_v63 = vrot.slane %v826_v59, 7 }
  0x9f   : > { %v811_v58 = vpop.f32.mrf.mxu0 }
  0xa0   : > { %v812_v60 = vadd.f32 %v1474_v55, %v811_v58 }
  0xa2   : > { %v827_v62 = vmax.f32 %v812_v60, 0.0 }
  0xa4   : > { %v840_v0 = vrot.slane %v827_v62, 7 }
  0xa6   : > { %v841_v2 = vsel %vm838_vm3, %v839_v63, %v840_v0 }
  0xa7   : > { %v873_v3 = vmul.f32 %v1476_v61, %v841_v2  ;;  %v814_v5 = vpop.f32.mrf.mxu0  ;;  %v910_v16 = vmul.f32 %v1477_v4, %v841_v2  ;;  %v865_v33 = vmul.f32 %v1475_v14, %v841_v2 }
  0xa8   : > { %v815_v9 = vadd.f32 %v1474_v55, %v814_v5 }
  0xa9   : > { %v885_v10 = vrot.slane %v873_v3, 1  ;;  %v922_v23 = vrot.slane %v910_v16, 2 }
  0xaa   : > { %v828_v15 = vmax.f32 %v815_v9, 0.0 }
  0xab   : > { %v886_v21 = vsel %vm705_vm0, %v1683_v12, %v885_v10  ;;  %v923_v36 = vsel %vm743_vm1, %v921_v27, %v922_v23 }
  0xac   : > { %v842_v19 = vrot.slane %v828_v15, 7  ;;  %v901_v29 = vadd.f32 %v886_v21, %v864_v20 }
  0xae   : > { %v843_v22 = vsel %vm838_vm3, %v840_v0, %v842_v19  ;;  %v938_v39 = vadd.f32 %v923_v36, %v901_v29  ;;  %v1202_v29 = vld [vmem:[%s1818_s3] sm:$0xff] }
  0xaf   : > { %v874_v24 = vmul.f32 %v1476_v61, %v843_v22  ;;  %v911_v25 = vmul.f32 %v1477_v4, %v843_v22  ;;  %v817_v26 = vpop.f32.mrf.mxu0  ;;  %v866_v51 = vmul.f32 %v1475_v14, %v843_v22  ;;  %1234 = vmatpush.msra.mxu3 %v1202_v29  ;;  %v1480_v36 = vld [vmem:[%s1826_s11 + $0x1] ss:$0 sm:$0xff] }
  0xb0   : > { %v818_v28 = vadd.f32 %v1474_v55, %v817_v26  ;;  %v956_v47 = vrot.slane %v938_v39, 1  ;;  %1436 = vmatmul.msk.f32.vlgmr.msra.gmra.mxu3 %vm772_vm2, %v1621_v6  ;;  %v1061_v39 = vmul.f32 0.0, %v1480_v36 }
  0xb1   : > { %v887_v30 = vrot.slane %v874_v24, 1  ;;  %v924_v32 = vrot.slane %v911_v25, 2  ;;  %v906_v24 = vadd.f32 %v1683_v12, %v864_v20  ;;  %v1478_v20 = vld [vmem:[%s1825_s10] ss:$0 sm:$0xff] }
  0xb2   : > { %v829_v34 = vmax.f32 %v818_v28, 0.0 }
  0xb3   : > { %v888_v35 = vsel %vm705_vm0, %v885_v10, %v887_v30  ;;  %v925_v40 = vsel %vm743_vm1, %v922_v23, %v924_v32  ;;  %v943_v26 = vadd.f32 %v921_v27, %v906_v24 }
  0xb4   : > { %v844_v37 = vrot.slane %v829_v34, 7  ;;  %v902_v38 = vadd.f32 %v888_v35, %v865_v33 }
  0xb6   : > { %v845_v41 = vsel %vm838_vm3, %v842_v19, %v844_v37  ;;  %v939_v42 = vadd.f32 %v925_v40, %v902_v38 }
  0xb7   : > { %v875_v43 = vmul.f32 %v1476_v61, %v845_v41  ;;  %v912_v44 = vmul.f32 %v1477_v4, %v845_v41  ;;  %v820_v45 = vpop.f32.mrf.mxu0  ;;  %v867_v2 = vmul.f32 %v1475_v14, %v845_v41 }
  0xb8   : > { %v821_v46 = vadd.f32 %v1474_v55, %v820_v45  ;;  %v957_v48 = vrot.slane %v939_v42, 1  ;;  %1437 = vmatmul.msk.f32.gmra.mxu3 %vm772_vm2, %v1625_v8  ;;  %v1481_v42 = vld [vmem:[%s1826_s11 + $0x2] ss:$0 sm:$0xff]  ;;  %v1740_v45 = vrot.slane %v1061_v39, 1 }
  0xb9   : > { %v889_v49 = vrot.slane %v875_v43, 1  ;;  %v926_v50 = vrot.slane %v912_v44, 2 }
  0xba   : > { %v830_v52 = vmax.f32 %v821_v46, 0.0  ;;  %v958_v53 = vsel %vm705_vm0, %v956_v47, %v957_v48  ;;  %v1479_v46 = vld [vmem:[%s1826_s11] ss:$0 sm:$0xff] }
  0xbb   : > { %1424 = vmatmul.msk.f32.vlgmr.msra.gmra.mxu1 %vm967_vm4, %v958_v53  ;;  %v890_v54 = vsel %vm705_vm0, %v887_v30, %v889_v49  ;;  %v927_v58 = vsel %vm743_vm1, %v924_v32, %v926_v50 }
  0xbc   : > { %v846_v56 = vrot.slane %v830_v52, 7  ;;  %v903_v57 = vadd.f32 %v890_v54, %v866_v51  ;;  %v1745_v51 = vmul.f32 0.0, %v1479_v46 }
  0xbe   : > { %v847_v59 = vsel %vm838_vm3, %v844_v37, %v846_v56  ;;  %v940_v55 = vadd.f32 %v927_v58, %v903_v57 }
  0xbf   : > { %v876_v60 = vmul.f32 %v1476_v61, %v847_v59  ;;  %v913_v62 = vmul.f32 %v1477_v4, %v847_v59  ;;  %v868_v10 = vmul.f32 %v1475_v14, %v847_v59  ;;  %v965_v14 = vrot.slane %v943_v26, 1 }
  0xc0   : > { %v959_v63 = vrot.slane %v940_v55, 1  ;;  %1438 = vmatmul.msk.f32.gmra.mxu3 %vm772_vm2, %v1635_v18 }
  0xc1   : > { %v891_v0 = vrot.slane %v876_v60, 1  ;;  %v928_v1 = vrot.slane %v913_v62, 2 }
  0xc2   : > { %v960_v3 = vsel %vm705_vm0, %v957_v48, %v959_v63 }
  0xc3   : > { %1425 = vmatmul.msk.f32.gmra.mxu1 %vm967_vm4, %v960_v3  ;;  %v892_v5 = vsel %vm705_vm0, %v889_v49, %v891_v0  ;;  %v894_v9 = vsel %vm705_vm0, %v891_v0, %v1683_v12  ;;  %v929_v16 = vsel %vm743_vm1, %v926_v50, %v928_v1  ;;  %v931_v19 = vsel %vm743_vm1, %v928_v1, %v921_v27  ;;  %v1134_v12 = vld [vmem:[%s1827_s12 + $0x8] sm:$0xff]  ;;  %v1133_v27 = vld [vmem:[%s1827_s12] sm:$0xff] }
  0xc4   : > { %v904_v15 = vadd.f32 %v892_v5, %v867_v2  ;;  %v905_v61 = vadd.f32 %v894_v9, %v868_v10  ;;  %1182 = vmatpush.msra.mxu2 %v1134_v12  ;;  %v1098_v49 = vmul.f32 0.0, %v1481_v42 }
  0xc6   : > { %v941_v17 = vadd.f32 %v929_v16, %v904_v15  ;;  %v942_v22 = vadd.f32 %v931_v19, %v905_v61  ;;  %1183 = vmatpush.msra.mxu2 %v1133_v27  ;;  %v1110_v58 = vrot.slane %v1098_v49, 2 }
  0xc8   : > { %v961_v4 = vrot.slane %v941_v17, 1  ;;  %v963_v23 = vrot.slane %v942_v22, 1  ;;  %1439 = vmatmul.msk.f32.gmra.mxu3 %vm772_vm2, %v1648_v31 }
  0xca   : > { %v962_v21 = vsel %vm705_vm0, %v959_v63, %v961_v4  ;;  %v964_v25 = vsel %vm705_vm0, %v961_v4, %v963_v23  ;;  %v966_v28 = vsel %vm705_vm0, %v963_v23, %v965_v14 }
  0xcb   : > { %1426 = vmatmul.msk.f32.gmra.mxu1 %vm967_vm4, %v962_v21 }
  0xd3   : > { %1427 = vmatmul.msk.f32.gmra.mxu1 %vm967_vm4, %v964_v25 }
  0xdb   : > { %1428 = vmatmul.msk.f32.gmra.mxu1 %vm967_vm4, %v966_v28 }
  0xe3   : > { %1429 = vmatmul.msk.f32.gmra.mxu1 %vm967_vm4, %v965_v14 }
 0x138   : > { %v997_v30 = vpop.f32.mrf.mxu1 }
 0x139   : > { %v998_v32 = vadd.f32 %v1478_v20, %v997_v30 }
 0x13b   : > { %v1015_v34 = vmax.f32 %v998_v32, 0.0 }
 0x13d   : > { %v1028_v38 = vrot.slane %v1015_v34, 6 }
 0x140   : > { %v1000_v33 = vpop.f32.mrf.mxu1 }
 0x141   : > { %v1001_v35 = vadd.f32 %v1478_v20, %v1000_v33 }
 0x143   : > { %v1016_v37 = vmax.f32 %v1001_v35, 0.0 }
 0x145   : > { %v1029_v6 = vrot.slane %v1016_v37, 6 }
 0x147   : > { %v1030_v40 = vsel %vm1027_vm5, %v1028_v38, %v1029_v6 }
 0x148   : > { %v1062_v41 = vmul.f32 %v1480_v36, %v1030_v40  ;;  %v1003_v43 = vpop.f32.mrf.mxu1  ;;  %v1099_v48 = vmul.f32 %v1481_v42, %v1030_v40  ;;  %v1054_v63 = vmul.f32 %v1479_v46, %v1030_v40 }
 0x149   : > { %v1004_v44 = vadd.f32 %v1478_v20, %v1003_v43 }
 0x14a   : > { %v1074_v8 = vrot.slane %v1062_v41, 1  ;;  %v1111_v54 = vrot.slane %v1099_v48, 2 }
 0x14b   : > { %v1017_v47 = vmax.f32 %v1004_v44, 0.0 }
 0x14c   : > { %v1075_v52 = vsel %vm705_vm0, %v1740_v45, %v1074_v8  ;;  %v1112_v2 = vsel %vm743_vm1, %v1110_v58, %v1111_v54 }
 0x14d   : > { %v1031_v50 = vrot.slane %v1017_v47, 6  ;;  %v1090_v55 = vadd.f32 %v1075_v52, %v1745_v51 }
 0x14f   : > { %v1032_v53 = vsel %vm1027_vm5, %v1029_v6, %v1031_v50  ;;  %v1127_v9 = vadd.f32 %v1112_v2, %v1090_v55 }
 0x150   : > { %v1063_v18 = vmul.f32 %v1480_v36, %v1032_v53  ;;  %v1100_v56 = vmul.f32 %v1481_v42, %v1032_v53  ;;  %v1006_v57 = vpop.f32.mrf.mxu1  ;;  %v1055_v24 = vmul.f32 %v1479_v46, %v1032_v53 }
 0x151   : > { %v1007_v59 = vadd.f32 %v1478_v20, %v1006_v57  ;;  %v1145_v19 = vrot.slane %v1127_v9, 2 }
 0x152   : > { %v1076_v60 = vrot.slane %v1063_v18, 1  ;;  %v1113_v62 = vrot.slane %v1100_v56, 2  ;;  %v1236_v18 = vpop.f32.mrf.mxu3  ;;  %v1482_v56 = vld [vmem:[%s1819_s4] ss:$0 sm:$0xff] }
 0x153   : > { %v1018_v0 = vmax.f32 %v1007_v59, 0.0 }
 0x154   : > { %v1077_v1 = vsel %vm705_vm0, %v1074_v8, %v1076_v60  ;;  %v1114_v10 = vsel %vm743_vm1, %v1111_v54, %v1113_v62 }
 0x155   : > { %v1033_v3 = vrot.slane %v1018_v0, 6  ;;  %v1091_v5 = vadd.f32 %v1077_v1, %v1054_v63 }
 0x157   : > { %v1034_v15 = vsel %vm1027_vm5, %v1031_v50, %v1033_v3  ;;  %v1128_v16 = vadd.f32 %v1114_v10, %v1091_v5 }
 0x158   : > { %v1064_v17 = vmul.f32 %v1480_v36, %v1034_v15  ;;  %v1101_v61 = vmul.f32 %v1481_v42, %v1034_v15  ;;  %v1009_v4 = vpop.f32.mrf.mxu1  ;;  %v1056_v38 = vmul.f32 %v1479_v46, %v1034_v15 }
 0x159   : > { %v1010_v31 = vadd.f32 %v1478_v20, %v1009_v4  ;;  %v1146_v21 = vrot.slane %v1128_v16, 2 }
 0x15a   : > { %v1078_v22 = vrot.slane %v1064_v17, 1  ;;  %v1115_v23 = vrot.slane %v1101_v61, 2  ;;  %v1239_v57 = vpop.f32.mrf.mxu3 }
 0x15b   : > { %v1019_v25 = vmax.f32 %v1010_v31, 0.0  ;;  %v1147_v26 = vsel %vm743_vm1, %v1145_v19, %v1146_v21  ;;  %v1240_v55 = vadd.f32 %v1482_v56, %v1239_v57 }
 0x15c   : > { %1430 = vmatmul.msk.f32.vlgmr.msra.gmra.mxu2 %vm967_vm4, %v1147_v26  ;;  %v1079_v14 = vsel %vm705_vm0, %v1076_v60, %v1078_v22  ;;  %v1116_v30 = vsel %vm743_vm1, %v1113_v62, %v1115_v23 }
 0x15d   : > { %v1035_v28 = vrot.slane %v1019_v25, 6  ;;  %v1092_v29 = vadd.f32 %v1079_v14, %v1055_v24  ;;  %v1254_v0 = vrot.slane %v1240_v55, 3 }
 0x15f   : > { %v1036_v12 = vsel %vm1027_vm5, %v1033_v3, %v1035_v28  ;;  %v1129_v27 = vadd.f32 %v1116_v30, %v1092_v29 }
 0x160   : > { %v1065_v20 = vmul.f32 %v1480_v36, %v1036_v12  ;;  %v1102_v32 = vmul.f32 %v1481_v42, %v1036_v12  ;;  %v1012_v33 = vpop.f32.mrf.mxu1  ;;  %v1057_v41 = vmul.f32 %v1479_v46, %v1036_v12  ;;  %v728_v36 = vadd.f32 %v1623_v7, %v1632_v13 }
 0x161   : > { %v1148_v34 = vrot.slane %v1129_v27, 2  ;;  %v1095_v7 = vadd.f32 %v1740_v45, %v1745_v51  ;;  %v1483_v51 = vld [vmem:[%s1828_s13] ss:$0 sm:$0xff] }
 0x162   : > { %v1080_v35 = vrot.slane %v1065_v20, 1  ;;  %v1117_v37 = vrot.slane %v1102_v32, 2  ;;  %v766_v47 = vadd.f32 %v1629_v11, %v728_v36  ;;  %v1242_v63 = vpop.f32.mrf.mxu3 }
 0x163   : > { %v1149_v6 = vsel %vm743_vm1, %v1146_v21, %v1148_v34  ;;  %v1132_v53 = vadd.f32 %v1110_v58, %v1095_v7  ;;  %v1243_v9 = vadd.f32 %v1482_v56, %v1242_v63 }
 0x164   : > { %1431 = vmatmul.msk.f32.gmra.mxu2 %vm967_vm4, %v1149_v6  ;;  %v1081_v39 = vsel %vm705_vm0, %v1078_v22, %v1080_v35  ;;  %v1083_v40 = vsel %vm705_vm0, %v1080_v35, %v1740_v45  ;;  %v1118_v42 = vsel %vm743_vm1, %v1115_v23, %v1117_v37  ;;  %1423 = vmatmul.msk.f32.gmra.mxu0 %vm772_vm2, %v766_v47 }
 0x165   : > { %v1093_v43 = vadd.f32 %v1081_v39, %v1056_v38  ;;  %v1094_v8 = vadd.f32 %v1083_v40, %v1057_v41  ;;  %v1120_v49 = vsel %vm743_vm1, %v1117_v37, %v1110_v58  ;;  %v1154_v11 = vrot.slane %v1132_v53, 2 }
 0x166   : > { %v1237_v45 = vadd.f32 %v1482_v56, %v1236_v18  ;;  %v1256_v16 = vrot.slane %v1243_v9, 3 }
 0x167   : > { %v1130_v44 = vadd.f32 %v1118_v42, %v1093_v43  ;;  %v1131_v52 = vadd.f32 %v1120_v49, %v1094_v8 }
 0x168   : > { %v1253_v58 = vrot.slane %v1237_v45, 3  ;;  %v1257_v31 = vsel %vm1252_vm7, %v1254_v0, %v1256_v16 }
 0x169   : > { %v1150_v48 = vrot.slane %v1130_v44, 2  ;;  %v1152_v46 = vrot.slane %v1131_v52, 2 }
 0x16a   : > { %v1255_v5 = vsel %vm1252_vm7, %v1253_v58, %v1254_v0  ;;  %v1245_v61 = vpop.f32.mrf.mxu3 }
 0x16b   : > { %v1151_v50 = vsel %vm743_vm1, %v1148_v34, %v1150_v48  ;;  %v1153_v13 = vsel %vm743_vm1, %v1150_v48, %v1152_v46  ;;  %v1155_v54 = vsel %vm743_vm1, %v1152_v46, %v1154_v11  ;;  %v1246_v19 = vadd.f32 %v1482_v56, %v1245_v61 }
 0x16c   : > { %1432 = vmatmul.msk.f32.gmra.mxu2 %vm967_vm4, %v1151_v50 }
 0x16d   : > { %v1258_v23 = vrot.slane %v1246_v19, 3 }
 0x16f   : > { %v1259_v26 = vsel %vm1252_vm7, %v1256_v16, %v1258_v23 }
 0x174   : > { %1433 = vmatmul.msk.f32.gmra.mxu2 %vm967_vm4, %v1153_v13 }
 0x17c   : > { %1434 = vmatmul.msk.f32.gmra.mxu2 %vm967_vm4, %v1155_v54 }
 0x184   : > { %1435 = vmatmul.msk.f32.gmra.mxu2 %vm967_vm4, %v1154_v11 }
 0x1df   : > { %v1185_v59 = vpop.f32.mrf.mxu2 }
 0x1e0   : > { %v1186_v60 = vadd.f32 %v1483_v51, %v1185_v59 }
 0x1e1   : > { %v823_v2 = vpop.f32.mrf.mxu0 }
 0x1e2   : > { %v1265_v62 = vadd.f32 %v1253_v58, %v1186_v60 }
 0x1e4   : > { %v1270_v1 = vmax.f32 %v1265_v62, 0.0 }
 0x1e6   : > { %1276 = vst.msk [vmem:[%s1793_s17 - $0x5] sm:$0xe0] %vm1275_vm6, %v1270_v1 }
 0x1e7   : > { %v1188_v3 = vpop.f32.mrf.mxu2 }
 0x1e8   : > { %v1189_v10 = vadd.f32 %v1483_v51, %v1188_v3 }
 0x1ea   : > { %v1266_v15 = vadd.f32 %v1255_v5, %v1189_v10 }
 0x1ec   : > { %v1271_v17 = vmax.f32 %v1266_v15, 0.0 }
 0x1ee   : > { %1277 = vst.msk [vmem:[%s1793_s17 + $0x3] sm:$0xff] %vm967_vm4, %v1271_v17 }
 0x1ef   : > { %v1191_v4 = vpop.f32.mrf.mxu2 }
 0x1f0   : > { %v1192_v21 = vadd.f32 %v1483_v51, %v1191_v4 }
 0x1f2   : > { %v1267_v22 = vadd.f32 %v1257_v31, %v1192_v21 }
 0x1f4   : > { %v1272_v24 = vmax.f32 %v1267_v22, 0.0 }
 0x1f6   : > { %1278 = vst.msk [vmem:[%s1793_s17 + $0xb] sm:$0xff] %vm967_vm4, %v1272_v24 }
 0x1f7   : > { %v1194_v25 = vpop.f32.mrf.mxu2 }
 0x1f8   : > { %v1195_v14 = vadd.f32 %v1483_v51, %v1194_v25 }
 0x1fa   : > { %v1268_v28 = vadd.f32 %v1259_v26, %v1195_v14 }
 0x1fc   : > { %v1273_v29 = vmax.f32 %v1268_v28, 0.0 }
 0x1fe   : > { %1279 = vst.msk [vmem:[%s1793_s17 + $0x13] sm:$0xff] %vm967_vm4, %v1273_v29 }
 0x1ff   : > { %v1197_v30 = vpop.f32.mrf.mxu2 }
 0x200   : > { %v1198_v12 = vadd.f32 %v1483_v51, %v1197_v30 }
 0x202   : > { %v1269_v27 = vadd.f32 %v1258_v23, %v1198_v12 }
 0x204   : > { %v1274_v20 = vmax.f32 %v1269_v27, 0.0 }
 0x206   : > { %1281 = vst.msk [vmem:[%s1793_s17 + $0x1b] sm:$0x1f] %vm1280_vm8, %v1274_v20 }
 0x207   : > { %v1200_v32 = vpop.f32.mrf.mxu2 }
 0x208 PF: > { %s24_s29 = sadd.s32 1, %s1506_s29   ;;  %s1830_s27 = smov %s1502_s28 }
 0x209   : > { %p21_p5 = scmp.ge.s32.totalorder %s24_s29, 4   ;;  %s1831_s28 = smov %s1833_s0 }
 0x20b   :  { %23 = sbr.rel (!%p21_p5) target bundleno = 2 (0x2), region = 112 }

</bundles_post_ra>
